<compile_context>
chip_gen: v5e
topology: v5e:2x2
jax: 0.10.0
libtpu: 0.0.40
codegen_flags: <defaults>
</compile_context>

<pallas_src>
import functools

import jax
import jax.numpy as jnp
from jax.experimental import pallas as pl
from jax.experimental.pallas import tpu as pltpu


def _round_up(x: int, m: int) -> int:
    return ((x + m - 1) // m) * m


def _choose_tile_m(m: int, tile_m_req: int) -> int:
    """Row-tile size: minimal single tile for tiny M; otherwise a multiple of
    128 (lane-dense transposed-output stores) with >= 2 grid steps so the
    "parallel" M axis can shard across both v7x TensorCores."""
    if m <= 256:
        return _round_up(m, 8)
    half = _round_up((m + 1) // 2, 128)
    return max(128, min(_round_up(tile_m_req, 128), half))


def _fused_mlp_kernel(*refs, num_layers: int, sigmoid_output: bool):
    """Runs one (tile_m, K) row-tile of x through the whole MLP.

    refs = (x_ref, w0, b0, ..., w{L-1}, b{L-1}, o_ref)
      * hidden-layer weights are pre-transposed to (in_pad, out_pad), biases are
        (1, out_pad); all hidden widths padded to multiples of 128.
      * the LAST layer's weight stays in (out_pad8, in_pad) torch layout and its
        bias is (out_pad8, 1): the final matmul is a trans-B contraction that
        directly yields the transposed (out_pad8, tile_m) output tile, so the
        store is lane-dense along tile_m with no 128-lane padding of output_dim.
    Hidden activations never leave VMEM; matmuls accumulate in f32 on the MXU.
    """
    x_ref = refs[0]
    o_ref = refs[-1]
    wb = refs[1:-1]

    h = x_ref[...]
    for i in range(num_layers - 1):
        w = wb[2 * i][...]
        b = wb[2 * i + 1][...]                                  # f32, (1, out_pad)
        h = jnp.dot(h.astype(w.dtype), w,
                    preferred_element_type=jnp.float32) + b     # MXU + VPU
        h = jnp.maximum(h, 0.0)                                 # ReLU (VPU)

    w_last = wb[-2][...]                                        # (out_pad8, in_pad)
    b_last = wb[-1][...]                                        # f32, (out_pad8, 1)
    # out_t[o, m] = sum_k w_last[o, k] * h[m, k]   (A @ B^T on the MXU)
    out_t = jax.lax.dot_general(
        w_last, h.astype(w_last.dtype),
        dimension_numbers=(((1,), (1,)), ((), ())),
        preferred_element_type=jnp.float32,
    ) + b_last
    if sigmoid_output:
        out_t = jax.nn.sigmoid(out_t)                           # EUP
    o_ref[...] = out_t.astype(o_ref.dtype)


def fused_mlp(x2, params, *, sigmoid_output: bool, tile_m: int = 1024):
    """Whole MLP as a single pallas_call.

    x2:     (M, K), any float dtype (cast happens in-kernel).
    params: ((w0_t (K, H_pad), b0 (1, H_pad)), ..., (wL (O_pad8, H_pad), bL (O_pad8, 1)))
    Returns (O_pad8, M_pad): transposed, row/col-padded output (caller slices).
    """
    m, k = x2.shape
    num_layers = len(params)
    out_pad8 = params[-1][0].shape[0]

    tm = _choose_tile_m(m, tile_m)
    m_pad = _round_up(m, tm)
    if m_pad != m:
        x2 = jnp.pad(x2, ((0, m_pad - m), (0, 0)))
    grid = (m_pad // tm,)

    in_specs = [pl.BlockSpec((tm, k), lambda i: (i, 0))]
    flat_args = [x2]
    for w, b in params:
        # Constant block index -> the (tiny) weights/biases are fetched once and
        # stay resident in VMEM across all row-tiles.  (If the Mosaic dump ever
        # shows them re-DMA'd per step, switch them to pipeline_mode=Buffered(1)
        # or a manual one-shot copy before scaling M.)
        in_specs.append(pl.BlockSpec(w.shape, lambda i: (0, 0)))
        in_specs.append(pl.BlockSpec(b.shape, lambda i: (0, 0)))
        flat_args += [w, b]

    # Explicit VMEM budget: resident params (x2 for safety), double-buffered
    # x/out tiles, plus f32 activation scratch; clamped to [32 MiB, 64 MiB] so
    # it is valid on v5e/v6e (128 MiB physical) and v7x (64 MiB physical).
    param_bytes = sum(w.size * w.dtype.itemsize + b.size * b.dtype.itemsize
                      for w, b in params)
    max_w = max([k] + [max(w.shape) for w, _ in params])
    est = (2 * param_bytes
           + 2 * tm * k * x2.dtype.itemsize
           + 2 * out_pad8 * tm * x2.dtype.itemsize
           + 4 * tm * max_w * 4)
    vmem_limit = int(min(64 * 1024 * 1024, max(32 * 1024 * 1024, 2 * est)))

    kernel = functools.partial(
        _fused_mlp_kernel, num_layers=num_layers, sigmoid_output=sigmoid_output)
    return pl.pallas_call(
        kernel,
        out_shape=jax.ShapeDtypeStruct((out_pad8, m_pad), x2.dtype),
        grid=grid,
        in_specs=in_specs,
        out_specs=pl.BlockSpec((out_pad8, tm), lambda i: (0, i)),
        compiler_params=pltpu.CompilerParams(
            dimension_semantics=("parallel",),
            vmem_limit_bytes=vmem_limit,
        ),
    )(*flat_args)


def _mlp_forward(x, params, *, sigmoid_output, output_dim, tile_m):
    lead = x.shape[:-1]
    x2 = x.reshape((-1, x.shape[-1]))        # native dtype; cast happens in-kernel
    m = x2.shape[0]
    out_t = fused_mlp(x2, params, sigmoid_output=sigmoid_output, tile_m=tile_m)
    # (out_pad8, m_pad): cheap slice+transpose of ~8x less data than a
    # 128-lane-padded output would touch.
    out = out_t[:output_dim, :m].T
    return out.reshape((*lead, output_dim))


class MLPPallas:
    """JAX/Pallas equivalent of kornia's MLP module (fused single-kernel forward)."""

    def __init__(self, input_dim, hidden_dim, output_dim, num_layers,
                 sigmoid_output=False, key=None, tile_m=1024,
                 param_dtype=jnp.float32):
        self.num_layers = num_layers
        self.sigmoid_output = sigmoid_output
        self.output_dim = output_dim

        if key is None:
            key = jax.random.PRNGKey(0)

        h = [hidden_dim] * (num_layers - 1)
        in_dims = [input_dim, *h]
        out_dims = [*h, output_dim]

        hidden_pad = _round_up(hidden_dim, 128)
        out_pad8 = _round_up(output_dim, 8)
        in_pads = [input_dim] + [hidden_pad] * (num_layers - 1)
        out_pads = [hidden_pad] * (num_layers - 1) + [out_pad8]

        self.torch_params = []   # (out, in) layout, f32 — for the reference check
        params = []
        for li, (n, k, n_pad, k_pad) in enumerate(
                zip(in_dims, out_dims, in_pads, out_pads)):
            key, wk, bk = jax.random.split(key, 3)
            # PyTorch nn.Linear default init: U(-1/sqrt(fan_in), 1/sqrt(fan_in)).
            bound = 1.0 / float(n) ** 0.5
            w = jax.random.uniform(wk, (k, n), jnp.float32, -bound, bound)
            b = jax.random.uniform(bk, (k,), jnp.float32, -bound, bound)
            self.torch_params.append((w, b))

            if li < num_layers - 1:
                # Hidden layer: pre-transposed (in_pad, out_pad), zero-padded to
                # 128-lane-dense widths; bias (1, out_pad).  Padding stays exact
                # zeros through bias + ReLU so it never perturbs the math.
                w_s = jnp.zeros((n_pad, k_pad), param_dtype).at[:n, :k].set(
                    w.T.astype(param_dtype))
                b_s = jnp.zeros((1, k_pad), jnp.float32).at[0, :k].set(b)
            else:
                # Last layer: torch (out, in) layout so the kernel's trans-B dot
                # emits the transposed output tile directly; out dim padded only
                # to a multiple of 8 (sublanes), NOT to 128 lanes.
                w_s = jnp.zeros((k_pad, n_pad), param_dtype).at[:k, :n].set(
                    w.astype(param_dtype))
                b_s = jnp.zeros((k_pad, 1), jnp.float32).at[:k, 0].set(b)
            params.append((w_s, b_s))
        self.params = tuple(params)

        self._forward = jax.jit(functools.partial(
            _mlp_forward,
            sigmoid_output=sigmoid_output,
            output_dim=output_dim,
            tile_m=tile_m,
        ))

    def __call__(self, x):
        return self._forward(x, self.params)


def mlp_reference(x, torch_params, num_layers, sigmoid_output):
    """Pure-JAX reference (PyTorch-layout weights) for correctness checking."""
    lead = x.shape[:-1]
    h = x.reshape((-1, x.shape[-1])).astype(jnp.float32)
    for i, (w, b) in enumerate(torch_params):
        h = jnp.dot(h, w.T, precision=jax.lax.Precision.HIGHEST) + b
        if i < num_layers - 1:
            h = jnp.maximum(h, 0.0)
    if sigmoid_output:
        h = jax.nn.sigmoid(h)
    return h.reshape((*lead, h.shape[-1]))


if __name__ == "__main__":
    key = jax.random.PRNGKey(0)
    key, xk = jax.random.split(key)

    # Small shapes consistent with the module: (batch, tokens, input_dim).
    batch, tokens = 2, 8
    input_dim, hidden_dim, output_dim, num_layers = 32, 64, 16, 3
    sigmoid_output = True

    x = jax.random.normal(xk, (batch, tokens, input_dim), jnp.float32)

    mlp = MLPPallas(input_dim, hidden_dim, output_dim, num_layers,
                    sigmoid_output=sigmoid_output, key=key)

    out = jax.block_until_ready(mlp(x))
    ref = mlp_reference(x, mlp.torch_params, num_layers, sigmoid_output)

    assert out.shape == (batch, tokens, output_dim)
    assert bool(jnp.allclose(out, ref, atol=2e-3, rtol=2e-3)), "mismatch vs reference"

    print("KERNEL_OK")
</pallas_src>

<mosaic_0001>
module attributes {stable_mosaic.version = 11 : i64} {
  func.func @_fused_mlp_kernel(%arg0: i32, %arg1: memref<16x32xf32, #tpu.memory_space<vmem>>, %arg2: memref<32x128xf32, #tpu.memory_space<vmem>>, %arg3: memref<1x128xf32, #tpu.memory_space<vmem>>, %arg4: memref<128x128xf32, #tpu.memory_space<vmem>>, %arg5: memref<1x128xf32, #tpu.memory_space<vmem>>, %arg6: memref<16x128xf32, #tpu.memory_space<vmem>>, %arg7: memref<16x1xf32, #tpu.memory_space<vmem>>, %arg8: memref<16x16xf32, #tpu.memory_space<vmem>>) attributes {dimension_semantics = [#tpu.dimension_semantics<parallel>], iteration_bounds = array<i64: 1>, scalar_prefetch = 0 : i64, scratch_operands = 0 : i64, tpu.core_type = #tpu.core_type<tc>, window_params = [{transform_indices = @transform_0, window_bounds = array<i64: 16, 32>}, {pipeline_mode = #tpu.pipeline_mode<synchronous>, transform_indices = @transform_1, window_bounds = array<i64: 32, 128>}, {pipeline_mode = #tpu.pipeline_mode<synchronous>, transform_indices = @transform_2, window_bounds = array<i64: 1, 128>}, {pipeline_mode = #tpu.pipeline_mode<synchronous>, transform_indices = @transform_3, window_bounds = array<i64: 128, 128>}, {pipeline_mode = #tpu.pipeline_mode<synchronous>, transform_indices = @transform_4, window_bounds = array<i64: 1, 128>}, {pipeline_mode = #tpu.pipeline_mode<synchronous>, transform_indices = @transform_5, window_bounds = array<i64: 16, 128>}, {pipeline_mode = #tpu.pipeline_mode<synchronous>, transform_indices = @transform_6, window_bounds = array<i64: 16, 1>}, {transform_indices = @transform_7, window_bounds = array<i64: 16, 16>}]} {
    %c0 = arith.constant 0 : index
    %c0_0 = arith.constant 0 : index
    %0 = vector.load %arg1[%c0, %c0_0] : memref<16x32xf32, #tpu.memory_space<vmem>>, vector<16x32xf32>
    %c0_1 = arith.constant 0 : index
    %c0_2 = arith.constant 0 : index
    %1 = vector.load %arg2[%c0_1, %c0_2] : memref<32x128xf32, #tpu.memory_space<vmem>>, vector<32x128xf32>
    %c0_3 = arith.constant 0 : index
    %c0_4 = arith.constant 0 : index
    %2 = vector.load %arg3[%c0_3, %c0_4] : memref<1x128xf32, #tpu.memory_space<vmem>>, vector<1x128xf32>
    %cst = arith.constant dense<0.000000e+00> : vector<16x128xf32>
    %3 = tpu.matmul %0, %1, %cst {dimension_numbers = #tpu.dot_dimension_numbers<[1], [0], [0], [1], [0, 0, 1, 1], [], []>} : vector<16x32xf32>, vector<32x128xf32>, vector<16x128xf32> -> vector<16x128xf32>
    %4 = vector.broadcast %2 : vector<1x128xf32> to vector<16x128xf32>
    %5 = arith.addf %3, %4 : vector<16x128xf32>
    %cst_5 = arith.constant 0.000000e+00 : f32
    %6 = vector.broadcast %cst_5 : f32 to vector<16x128xf32>
    %7 = arith.maximumf %5, %6 : vector<16x128xf32>
    %c0_6 = arith.constant 0 : index
    %c0_7 = arith.constant 0 : index
    %8 = vector.load %arg4[%c0_6, %c0_7] : memref<128x128xf32, #tpu.memory_space<vmem>>, vector<128x128xf32>
    %c0_8 = arith.constant 0 : index
    %c0_9 = arith.constant 0 : index
    %9 = vector.load %arg5[%c0_8, %c0_9] : memref<1x128xf32, #tpu.memory_space<vmem>>, vector<1x128xf32>
    %cst_10 = arith.constant dense<0.000000e+00> : vector<16x128xf32>
    %10 = tpu.matmul %7, %8, %cst_10 {dimension_numbers = #tpu.dot_dimension_numbers<[1], [0], [0], [1], [0, 0, 1, 1], [], []>} : vector<16x128xf32>, vector<128x128xf32>, vector<16x128xf32> -> vector<16x128xf32>
    %11 = vector.broadcast %9 : vector<1x128xf32> to vector<16x128xf32>
    %12 = arith.addf %10, %11 : vector<16x128xf32>
    %cst_11 = arith.constant 0.000000e+00 : f32
    %13 = vector.broadcast %cst_11 : f32 to vector<16x128xf32>
    %14 = arith.maximumf %12, %13 : vector<16x128xf32>
    %c0_12 = arith.constant 0 : index
    %c0_13 = arith.constant 0 : index
    %15 = vector.load %arg6[%c0_12, %c0_13] : memref<16x128xf32, #tpu.memory_space<vmem>>, vector<16x128xf32>
    %c0_14 = arith.constant 0 : index
    %c0_15 = arith.constant 0 : index
    %16 = vector.load %arg7[%c0_14, %c0_15] : memref<16x1xf32, #tpu.memory_space<vmem>>, vector<16x1xf32>
    %cst_16 = arith.constant dense<0.000000e+00> : vector<16x16xf32>
    %17 = tpu.matmul %15, %14, %cst_16 {dimension_numbers = #tpu.dot_dimension_numbers<[1], [1], [0], [0], [0, 0, 1, 0], [], []>} : vector<16x128xf32>, vector<16x128xf32>, vector<16x16xf32> -> vector<16x16xf32>
    %18 = vector.broadcast %16 : vector<16x1xf32> to vector<16x16xf32>
    %19 = arith.addf %17, %18 : vector<16x16xf32>
    %20 = arith.negf %19 : vector<16x16xf32>
    %21 = math.exp %20 : vector<16x16xf32>
    %cst_17 = arith.constant 1.000000e+00 : f32
    %22 = vector.broadcast %cst_17 : f32 to vector<16x16xf32>
    %23 = arith.addf %22, %21 : vector<16x16xf32>
    %24 = arith.divf %22, %23 : vector<16x16xf32>
    %c0_18 = arith.constant 0 : index
    %c0_19 = arith.constant 0 : index
    %25 = vector.load %arg8[%c0_18, %c0_19] : memref<16x16xf32, #tpu.memory_space<vmem>>, vector<16x16xf32>
    tpu.vector_store %arg8[%c0_18, %c0_19], %24 {strides = array<i32>} : memref<16x16xf32, #tpu.memory_space<vmem>>, vector<16x16xf32>,
    return
  }
  func.func @transform_0(%arg0: i32) -> (i32, i32) {
    %c0_i32 = arith.constant 0 : i32
    %c0_i32_0 = arith.constant 0 : i32
    return %arg0, %c0_i32 : i32, i32
  }
  func.func @transform_1(%arg0: i32) -> (i32, i32) {
    %c0_i32 = arith.constant 0 : i32
    %c0_i32_0 = arith.constant 0 : i32
    %c0_i32_1 = arith.constant 0 : i32
    return %c0_i32, %c0_i32_0 : i32, i32
  }
  func.func @transform_2(%arg0: i32) -> (i32, i32) {
    %c0_i32 = arith.constant 0 : i32
    %c0_i32_0 = arith.constant 0 : i32
    %c0_i32_1 = arith.constant 0 : i32
    return %c0_i32, %c0_i32_0 : i32, i32
  }
  func.func @transform_3(%arg0: i32) -> (i32, i32) {
    %c0_i32 = arith.constant 0 : i32
    %c0_i32_0 = arith.constant 0 : i32
    %c0_i32_1 = arith.constant 0 : i32
    return %c0_i32, %c0_i32_0 : i32, i32
  }
  func.func @transform_4(%arg0: i32) -> (i32, i32) {
    %c0_i32 = arith.constant 0 : i32
    %c0_i32_0 = arith.constant 0 : i32
    %c0_i32_1 = arith.constant 0 : i32
    return %c0_i32, %c0_i32_0 : i32, i32
  }
  func.func @transform_5(%arg0: i32) -> (i32, i32) {
    %c0_i32 = arith.constant 0 : i32
    %c0_i32_0 = arith.constant 0 : i32
    %c0_i32_1 = arith.constant 0 : i32
    return %c0_i32, %c0_i32_0 : i32, i32
  }
  func.func @transform_6(%arg0: i32) -> (i32, i32) {
    %c0_i32 = arith.constant 0 : i32
    %c0_i32_0 = arith.constant 0 : i32
    %c0_i32_1 = arith.constant 0 : i32
    return %c0_i32, %c0_i32_0 : i32, i32
  }
  func.func @transform_7(%arg0: i32) -> (i32, i32) {
    %c0_i32 = arith.constant 0 : i32
    %c0_i32_0 = arith.constant 0 : i32
    return %c0_i32, %arg0 : i32, i32
  }
}

</mosaic_0001>

<bundles_post_ra>
// kernel: _mlp_forward.1
= control target key start
LH: loop header
LB: loop body
LE: loop exit
PB: predicated region body
PF: predicated region fallthrough
CT: control target
= control target key end

     0   :  { %12 = vsyncpa [#allocation3], 0  ;;  %s440_s0 = inlined_call_operand.vmem [shape: f32[16,32], index: 0, kind: input, shape index: {}]   ;;  %s441_s1 = inlined_call_operand.hbm [shape: f32[32,128], index: 1, kind: input, shape index: {}]   ;;  %s442_s2 = inlined_call_operand.vmem [shape: f32[1,128], index: 2, kind: input, shape index: {}]   ;;  %s443_s3 = inlined_call_operand.hbm [shape: f32[128,128], index: 3, kind: input, shape index: {}]   ;;  %s444_s4 = inlined_call_operand.vmem [shape: f32[1,128], index: 4, kind: input, shape index: {}]   ;;  %s445_s5 = inlined_call_operand.hbm [shape: f32[16,128], index: 5, kind: input, shape index: {}]   ;;  %s446_s6 = inlined_call_operand.vmem [shape: f32[16,1], index: 6, kind: input, shape index: {}]   ;;  %s447_s7 = inlined_call_operand.vmem [shape: f32[16,16], index: 7, kind: output, shape index: {}]  }
   0x1   :  { %13 = vsyncpa [#allocation5], 0  ;;  %s35_s26 = sshll.u32 %s443_s3, 4  ;;  %s357_s27 = smov [#allocation4]   ;;  %s36_s26 = int_to_ptr.hbm [resolvable:$true] %s35_s26 }
   0x2   :  { %s37_s28 = sshll.u32 %s357_s27, 4  ;;  %s20_s8 = sshll.u32 %s441_s1, 4  ;;  %s38_s28 = int_to_ptr.vmem [resolvable:$true] %s37_s28  ;;  %s21_s8 = int_to_ptr.hbm [resolvable:$true] %s20_s8 }
   0x3   :  { %s358_s9 = smov 128   ;;  %s359_s10 = smov 8  }
   0x4   :  { %43 = dma.hbm_to_vmem [thread:$0]  %s36_s26, 2048, %s38_s28, [#allocation5], %s358_s9, %s358_s9, %s359_s10  }
   0x5   :  { %s360_s11 = smov [#allocation2]   ;;  %s50_s15 = sshll.u32 %s445_s5, 4  ;;  %s51_s15 = int_to_ptr.hbm [resolvable:$true] %s50_s15 }
   0x6   :  { %s22_s12 = sshll.u32 %s360_s11, 4  ;;  %s361_s3 = smov [#allocation6]   ;;  %s23_s12 = int_to_ptr.vmem [resolvable:$true] %s22_s12 }
   0x7   :  { %28 = dma.hbm_to_vmem [thread:$0]  %s21_s8, 512, %s23_s12, [#allocation3], %s358_s9, %s358_s9, %s359_s10  }
   0x8   :  { %s52_s16 = sshll.u32 %s361_s3, 4  ;;  %s53_s16 = int_to_ptr.vmem [resolvable:$true] %s52_s16 }
   0x9   :  { %58 = dma.hbm_to_vmem [thread:$0]  %s51_s15, 256, %s53_s16, [#allocation5], %s358_s9, %s358_s9, %s359_s10  }
   0xa   :  { %353 = dma.done.wait [#allocation3], 512  }
   0xb   :  { %354 = vsyncadd [#allocation3], 4294966784 }
   0xc   :  { %355 = dma.done.wait [#allocation5], 2304  }
   0xd   :  { %356 = vsyncadd [#allocation5], 4294964992  ;;  %v78_v0 = vld [vmem:[#allocation2 + $0x18] sm:$0xff]  ;;  %v77_v1 = vld [vmem:[#allocation2 + $0x10] sm:$0xff]  ;;  %vm83_vm0 = vcmask 261120   ;;  %v362_v29 = vmov 0  }
   0xe   :  { %102 = vmatpush.msra.mxu0 %v78_v0  ;;  %v76_v2 = vld [vmem:[#allocation2 + $0x8] sm:$0xff]  ;;  %v130_v3 = vld [vmem:[#allocation4 + $0x78] sm:$0xff]  ;;  %v129_v4 = vld [vmem:[#allocation4 + $0x70] sm:$0xff]  ;;  %270 = vset.pattern.permute.xlu0 %v362_v29  ;;  %vm235_vm4 = vcmask 130048  }
   0xf   :  { %135 = vmatpush.msra.mxu1 %v130_v3  ;;  %v75_v5 = vld [vmem:[#allocation2] sm:$0xff]  ;;  %v128_v6 = vld [vmem:[#allocation4 + $0x68] sm:$0xff]  ;;  %248 = vmatpush.msra.mxu3 %v130_v3  ;;  %v126_v9 = vld [vmem:[#allocation4 + $0x58] sm:$0xff] }
  0x10   :  { %103 = vmatpush.msra.mxu0 %v77_v1  ;;  %v73_v7 = vld [vmem:[%s440_s0] sm:$0xff]  ;;  %v125_v10 = vld [vmem:[#allocation4 + $0x50] sm:$0xff]  ;;  %v124_v11 = vld [vmem:[#allocation4 + $0x48] sm:$0xff] }
  0x11   :  { %136 = vmatpush.msra.mxu1 %v129_v4  ;;  %v127_v8 = vld [vmem:[#allocation4 + $0x60] sm:$0xff]  ;;  %249 = vmatpush.msra.mxu3 %v129_v4  ;;  %v74_v12 = vld [vmem:[%s440_s0 + $0x8] sm:$0xff]  ;;  %v122_v14 = vld [vmem:[#allocation4 + $0x38] sm:$0xff] }
  0x12   :  { %104 = vmatpush.msra.mxu0 %v76_v2  ;;  %v123_v13 = vld [vmem:[#allocation4 + $0x40] sm:$0xff]  ;;  %v121_v15 = vld [vmem:[#allocation4 + $0x30] sm:$0xff]  ;;  %v120_v16 = vld [vmem:[#allocation4 + $0x28] sm:$0xff] }
  0x13   :  { %137 = vmatpush.msra.mxu1 %v128_v6  ;;  %250 = vmatpush.msra.mxu3 %v128_v6  ;;  %v119_v17 = vld [vmem:[#allocation4 + $0x20] sm:$0xff]  ;;  %v118_v18 = vld [vmem:[#allocation4 + $0x18] sm:$0xff]  ;;  %v117_v19 = vld [vmem:[#allocation4 + $0x10] sm:$0xff] }
  0x14   :  { %105 = vmatpush.msra.mxu0 %v75_v5  ;;  %v116_v20 = vld [vmem:[#allocation4 + $0x8] sm:$0xff]  ;;  %v115_v21 = vld [vmem:[#allocation4] sm:$0xff] }
  0x15   :  { %244 = vmatmul.msk.f32.vlgmr.msra.gmra.mxu0 %vm83_vm0, %v73_v7  ;;  %138 = vmatpush.msra.mxu1 %v127_v8  ;;  %v271_v22 = vld [vmem:[%s442_s2] ss:$0 sm:$0xff]  ;;  %v163_v31 = vld [vmem:[%s446_s6 + $0x8] sm:$0xff] }
  0x16   :  { %251 = vmatpush.msra.mxu3 %v127_v8  ;;  %v162_v30 = vld [vmem:[%s446_s6] sm:$0xff]  ;;  %v161_v40 = vld [vmem:[#allocation6 + $0x8] sm:$0xff] }
  0x17   :  { %139 = vmatpush.msra.mxu1 %v126_v9  ;;  %166 = vperm.xlu0 %270, %v162_v30   ;;  %v272_v32 = vld [vmem:[%s444_s4] ss:$0 sm:$0xff] }
  0x18   :  { %252 = vmatpush.msra.mxu3 %v126_v9  ;;  %v160_v39 = vld [vmem:[#allocation6] sm:$0xff] }
  0x19   :  { %140 = vmatpush.msra.mxu1 %v125_v10 }
  0x1a   :  { %253 = vmatpush.msra.mxu3 %v125_v10 }
  0x1b   :  { %141 = vmatpush.msra.mxu1 %v124_v11 }
  0x1c   :  { %254 = vmatpush.msra.mxu3 %v124_v11 }
  0x1d   :  { %245 = vmatmul.msk.f32.gmra.mxu0 %vm83_vm0, %v74_v12  ;;  %142 = vmatpush.msra.mxu1 %v123_v13 }
  0x1e   :  { %255 = vmatpush.msra.mxu3 %v123_v13 }
  0x1f   :  { %143 = vmatpush.msra.mxu1 %v122_v14  ;;  %171 = vperm.xlu0 %270, %v163_v31  }
  0x20   :  { %256 = vmatpush.msra.mxu3 %v122_v14 }
  0x21   :  { %144 = vmatpush.msra.mxu1 %v121_v15 }
  0x22   :  { %257 = vmatpush.msra.mxu3 %v121_v15 }
  0x23   :  { %145 = vmatpush.msra.mxu1 %v120_v16 }
  0x24   :  { %258 = vmatpush.msra.mxu3 %v120_v16 }
  0x25   :  { %146 = vmatpush.msra.mxu1 %v119_v17 }
  0x26   :  { %259 = vmatpush.msra.mxu3 %v119_v17 }
  0x27   :  { %147 = vmatpush.msra.mxu1 %v118_v18 }
  0x28   :  { %260 = vmatpush.msra.mxu3 %v118_v18 }
  0x29   :  { %148 = vmatpush.msra.mxu1 %v117_v19 }
  0x2a   :  { %261 = vmatpush.msra.mxu3 %v117_v19 }
  0x2b   :  { %149 = vmatpush.msra.mxu1 %v116_v20 }
  0x2c   :  { %262 = vmatpush.msra.mxu3 %v116_v20 }
  0x2d   :  { %150 = vmatpush.msra.mxu1 %v115_v21 }
  0x2e   :  { %263 = vmatpush.msra.mxu3 %v115_v21 }
  0x89   :  { %v167_v41 = vpop.permute.xlu0 %166 }
  0x91   :  { %v172_v45 = vpop.permute.xlu0 %171 }
  0x92   :  { %v107_v23 = vpop.f32.mrf.mxu0 }
  0x93   :  { %v108_v24 = vadd.f32 %v271_v22, %v107_v23 }
  0x95   :  { %v113_v25 = vmax.f32 %v108_v24, 0.0 }
  0x97   :  { %151 = vmatmul.f32.vlgmr.msra.gmra.mxu1 %v113_v25 }
  0x9a   :  { %v110_v26 = vpop.f32.mrf.mxu0 }
  0x9b   :  { %v111_v27 = vadd.f32 %v271_v22, %v110_v26 }
  0x9d   :  { %v114_v28 = vmax.f32 %v111_v27, 0.0 }
  0x9f   :  { %154 = vmatmul.f32.vlgmr.msra.gmra.mxu3 %v114_v28 }
 0x114   :  { %v152_v33 = vpop.f32.mrf.mxu1 }
 0x115   :  { %v153_v36 = vadd.f32 %v272_v32, %v152_v33 }
 0x117   :  { %v158_v38 = vmax.f32 %v153_v36, 0.0 }
 0x122   :  { %v155_v34 = vpop.f32.mrf.mxu3 }
 0x123   :  { %v156_v35 = vadd.f32 %v272_v32, %v155_v34 }
 0x125   :  { %v159_v37 = vmax.f32 %v156_v35, 0.0 }
 0x127   :  { %188 = vmatpush.xpose.msra.mxu2 %v159_v37 }
 0x12b   :  { %189 = vmatpush.xpose.msra.mxu2 %v158_v38 }
 0x12e   :  { %190 = vmatmul.f32.vlgmr.msra.gmra.mxu2 %v160_v39 }
 0x136   :  { %193 = vmatmul.f32.gmra.mxu2 %v161_v40 }
 0x1b1   :  { %v191_v42 = vpop.f32.mrf.mxu2 }
 0x1b2   :  { %v192_v43 = vadd.f32 %v191_v42, %v167_v41 }
 0x1b4   :  { %v246_v44 = vmul.f32 -1.442695, %v192_v43 }
 0x1b6   :  { %273 = vpow2.f32 %v246_v44 }
 0x1b9   :  { %v194_v46 = vpop.f32.mrf.mxu2 }
 0x1ba   :  { %v195_v47 = vadd.f32 %v194_v46, %v172_v45 }
 0x1bc   :  { %v274_v48 = vpop.eup %273  ;;  %v247_v49 = vmul.f32 -1.442695, %v195_v47 }
 0x1bd   :  { %v203_v50 = vadd.f32 1.0, %v274_v48 }
 0x1be   :  { %275 = vpow2.f32 %v247_v49 }
 0x1bf   :  { %277 = vrcp.f32 %v203_v50  ;;  %v216_v56 = vand.u32 2147483648, %v203_v50  ;;  %v214_v58 = vand.u32 2147483647, %v203_v50  ;;  %vm210_vm2 = vweird.f32 %v203_v50 }
 0x1c1   :  { %v217_v61 = vor.u32 1.1754944e-38, %v216_v56  ;;  %vm215_vm5 = vcmp.eq.f32.partialorder %v214_v58, 8.507059e+37 }
 0x1c4   :  { %v276_v51 = vpop.eup %275 }
 0x1c5   :  { %v278_v52 = vpop.eup %277  ;;  %v204_v53 = vadd.f32 1.0, %v276_v51 }
 0x1c6   :  { %v206_v54 = vmul.f32 %v278_v52, %v203_v50  ;;  %vm211_vm1 = vweird.f32 %v278_v52 }
 0x1c7   :  { %279 = vrcp.f32 %v204_v53  ;;  %vm212_vm3 = vmor %vm210_vm2, %vm211_vm1  ;;  %v231_v2 = vand.u32 2147483648, %v204_v53  ;;  %v229_v4 = vand.u32 2147483647, %v204_v53  ;;  %vm225_vm7 = vweird.f32 %v204_v53 }
 0x1c8   :  { %v207_v55 = vsub.f32 1.0, %v206_v54 }
 0x1c9   :  { %v232_v6 = vor.u32 1.1754944e-38, %v231_v2  ;;  %vm230_vm9 = vcmp.eq.f32.partialorder %v229_v4, 8.507059e+37 }
 0x1ca   :  { %v208_v57 = vmul.f32 %v278_v52, %v207_v55 }
 0x1cc   :  { %v209_v59 = vadd.f32 %v278_v52, %v208_v57 }
 0x1cd   :  { %v280_v60 = vpop.eup %279 }
 0x1ce   :  { %v213_v62 = vsel %vm212_vm3, %v278_v52, %v209_v59  ;;  %v221_v63 = vmul.f32 %v280_v60, %v204_v53  ;;  %vm226_vm6 = vweird.f32 %v280_v60 }
 0x1cf   :  { %v218_v0 = vsel %vm215_vm5, %v217_v61, %v213_v62  ;;  %vm227_vm8 = vmor %vm225_vm7, %vm226_vm6 }
 0x1d0   :  { %236 = vst.msk [vmem:[%s447_s7] sm:$0xff] %vm235_vm4, %v218_v0  ;;  %v222_v1 = vsub.f32 1.0, %v221_v63 }
 0x1d2   :  { %v223_v3 = vmul.f32 %v280_v60, %v222_v1 }
 0x1d4   :  { %v224_v5 = vadd.f32 %v280_v60, %v223_v3 }
 0x1d6   :  { %v228_v7 = vsel %vm227_vm8, %v280_v60, %v224_v5 }
 0x1d7   :  { %v233_v8 = vsel %vm230_vm9, %v232_v6, %v228_v7 }
 0x1d8   :  { %237 = vst.msk [vmem:[%s447_s7 + $0x8] sm:$0xff] %vm235_vm4, %v233_v8 }
 0x1d9   :  { %242 = vsyncpa [#allocation3], 1 }
 0x1da   :  { %243 = vsyncpa [#allocation5], 1 }

</bundles_post_ra>
